<compile_context>
chip_gen: v6e
topology: v6e:2x2x1
jax: 0.10.0
libtpu: 0.0.40
codegen_flags: <defaults>
</compile_context>

<pallas_src>
import functools

import jax
import jax.numpy as jnp
from jax import lax
from jax.experimental import pallas as pl
from jax.experimental.pallas import tpu as pltpu

HIDDEN = 64
INPUT = 3
OUTPUT = 3
SUBLANE = 8
IPAD = 8  # input feature dim zero-padded 3 -> 8 (sublane-aligned contraction dim)


def lstm_fused_kernel(x_ref, wih_ref, whh_ref, bias_ref, wfc_ref, bfc_ref,
                      out_ref, xp_ref, *, T, Bp):
    """Fused LSTM: input projection + recurrence + final Linear, fully VMEM-resident.

    x_ref   : (T*Bp, IPAD) f32 — time-major, batch-padded, feature-padded input
    wih_ref : (IPAD, 4H)   f32 — W_ih^T (g-gate columns pre-scaled by 2)
    whh_ref : (H, 4H)      f32 — W_hh^T (g-gate columns pre-scaled by 2)
    bias_ref: (1, 4H)      f32 — b_ih + b_hh (g-gate entries pre-scaled by 2)
    wfc_ref : (H, OUTPUT)  f32 — W_fc^T
    bfc_ref : (1, OUTPUT)  f32 — b_fc
    out_ref : (Bp, OUTPUT) f32 — fc(h_T)
    xp_ref  : (T*Bp, 4H)   f32 VMEM scratch — hoisted input projection
    """
    # Hoisted input projection for ALL timesteps: one MXU call off the serial path.
    xp_ref[...] = (
        jnp.dot(x_ref[...], wih_ref[...], preferred_element_type=jnp.float32)
        + bias_ref[...]
    )

    # Recurrent weights: load + cast to bf16 once, reuse every step (fewer MXU passes).
    whh_bf = whh_ref[...].astype(jnp.bfloat16)

    h0 = jnp.zeros((Bp, HIDDEN), jnp.float32)
    c0 = jnp.zeros((Bp, HIDDEN), jnp.float32)

    def step(t, carry):
        h, c = carry
        row = pl.multiple_of(t * Bp, SUBLANE)
        # Only the recurrent matmul stays on the serial path (bf16 x bf16 -> f32 acc).
        gates = xp_ref[pl.ds(row, Bp), :] + jnp.dot(
            h.astype(jnp.bfloat16), whh_bf, preferred_element_type=jnp.float32)

        # One full-width sigmoid; the g-gate tanh is recovered via tanh(x)=2*sigmoid(2x)-1
        # (its inputs were pre-scaled by 2 in the wrapper).
        sg = jax.nn.sigmoid(gates)
        i_g = sg[:, 0 * HIDDEN:1 * HIDDEN]
        f_g = sg[:, 1 * HIDDEN:2 * HIDDEN]
        g_g = 2.0 * sg[:, 2 * HIDDEN:3 * HIDDEN] - 1.0
        o_g = sg[:, 3 * HIDDEN:4 * HIDDEN]

        c_new = f_g * c + i_g * g_g
        h_new = o_g * jnp.tanh(c_new)
        return (h_new, c_new)

    # Full unroll only for tiny T; cap otherwise to bound instruction/vreg pressure.
    h_T, _ = lax.fori_loop(0, T, step, (h0, c0), unroll=(T if T <= 8 else 8))

    # Final Linear(64 -> 3) fused in-kernel (one tiny matmul + masked 3-lane store).
    out_ref[...] = (
        jnp.dot(h_T, wfc_ref[...], preferred_element_type=jnp.float32) + bfc_ref[...]
    )


def satellite_lstm(x, params):
    """x: (B, T, INPUT) float32, batch_first like PyTorch. Returns (B, OUTPUT)."""
    B, T, I = x.shape
    assert I == INPUT
    Bp = ((B + SUBLANE - 1) // SUBLANE) * SUBLANE  # pad batch to the 8-sublane tile

    # Time-major, batch-padded, feature-padded (zeros), flattened to (T*Bp, IPAD).
    x_tm = jnp.transpose(x, (1, 0, 2)).astype(jnp.float32)       # (T, B, I)
    x_tm = jnp.pad(x_tm, ((0, 0), (0, Bp - B), (0, IPAD - I)))   # (T, Bp, IPAD)
    x_flat = x_tm.reshape(T * Bp, IPAD)

    # Pre-scale the g-gate columns by 2 so the kernel can use tanh(x) = 2*sigmoid(2x) - 1.
    gate_scale = jnp.concatenate([
        jnp.ones((2 * HIDDEN,), jnp.float32),
        jnp.full((HIDDEN,), 2.0, jnp.float32),
        jnp.ones((HIDDEN,), jnp.float32),
    ])
    wih_t = params["w_ih"].T.astype(jnp.float32) * gate_scale        # (I, 4H)
    wih_t = jnp.pad(wih_t, ((0, IPAD - I), (0, 0)))                  # (IPAD, 4H)
    whh_t = params["w_hh"].T.astype(jnp.float32) * gate_scale        # (H, 4H)
    bias = ((params["b_ih"] + params["b_hh"]).astype(jnp.float32)
            * gate_scale).reshape(1, 4 * HIDDEN)
    wfc_t = params["w_fc"].T.astype(jnp.float32)                     # (H, OUTPUT)
    bfc = params["b_fc"].astype(jnp.float32).reshape(1, OUTPUT)

    vmem = pltpu.MemorySpace.VMEM
    out = pl.pallas_call(
        functools.partial(lstm_fused_kernel, T=T, Bp=Bp),
        out_shape=jax.ShapeDtypeStruct((Bp, OUTPUT), jnp.float32),
        in_specs=[pl.BlockSpec(memory_space=vmem)] * 6,
        out_specs=pl.BlockSpec(memory_space=vmem),
        scratch_shapes=[pltpu.VMEM((T * Bp, 4 * HIDDEN), jnp.float32)],
    )(x_flat, wih_t, whh_t, bias, wfc_t, bfc)

    return out[:B]


def reference_lstm(x, params):
    """Pure-JAX f32 reference matching torch.nn.LSTM + Linear semantics."""
    B, T, _ = x.shape
    w_ih, w_hh = params["w_ih"], params["w_hh"]
    b = params["b_ih"] + params["b_hh"]

    def step(carry, x_t):
        h, c = carry
        gates = x_t @ w_ih.T + h @ w_hh.T + b
        i = jax.nn.sigmoid(gates[:, 0 * HIDDEN:1 * HIDDEN])
        f = jax.nn.sigmoid(gates[:, 1 * HIDDEN:2 * HIDDEN])
        g = jnp.tanh(gates[:, 2 * HIDDEN:3 * HIDDEN])
        o = jax.nn.sigmoid(gates[:, 3 * HIDDEN:4 * HIDDEN])
        c_new = f * c + i * g
        h_new = o * jnp.tanh(c_new)
        return (h_new, c_new), None

    h0 = jnp.zeros((B, HIDDEN), jnp.float32)
    c0 = jnp.zeros((B, HIDDEN), jnp.float32)
    (h_T, _), _ = lax.scan(step, (h0, c0), jnp.transpose(x, (1, 0, 2)))
    return h_T @ params["w_fc"].T + params["b_fc"]


def init_params(key):
    """Deterministic init mimicking PyTorch's U(-1/sqrt(H), 1/sqrt(H))."""
    k = 1.0 / jnp.sqrt(jnp.float32(HIDDEN))
    ks = jax.random.split(key, 6)
    u = lambda kk, shape: jax.random.uniform(kk, shape, jnp.float32, -k, k)
    return {
        "w_ih": u(ks[0], (4 * HIDDEN, INPUT)),
        "w_hh": u(ks[1], (4 * HIDDEN, HIDDEN)),
        "b_ih": u(ks[2], (4 * HIDDEN,)),
        "b_hh": u(ks[3], (4 * HIDDEN,)),
        "w_fc": u(ks[4], (OUTPUT, HIDDEN)),
        "b_fc": u(ks[5], (OUTPUT,)),
    }


if __name__ == "__main__":
    key = jax.random.PRNGKey(0)
    k_param, k_x = jax.random.split(key)
    params = init_params(k_param)

    B, T = 4, 8
    x = jax.random.normal(k_x, (B, T, INPUT), jnp.float32)

    out = satellite_lstm(x, params)
    out = jax.block_until_ready(out)

    ref = reference_lstm(x, params)
    assert out.shape == (B, OUTPUT)
    # bf16 recurrent-matmul operands (per perf review) introduce small drift vs. the
    # f32 reference; tolerance relaxed accordingly.
    assert jnp.allclose(out, ref, atol=2e-2, rtol=2e-2), "mismatch vs reference"

    print("KERNEL_OK")
</pallas_src>

<mosaic_0001>
module attributes {stable_mosaic.version = 11 : i64} {
  func.func @lstm_fused_kernel(%arg0: memref<64x8xf32, #tpu.memory_space<vmem>>, %arg1: memref<8x256xf32, #tpu.memory_space<vmem>>, %arg2: memref<64x256xf32, #tpu.memory_space<vmem>>, %arg3: memref<1x256xf32, #tpu.memory_space<vmem>>, %arg4: memref<64x3xf32, #tpu.memory_space<vmem>>, %arg5: memref<1x3xf32, #tpu.memory_space<vmem>>, %arg6: memref<8x3xf32, #tpu.memory_space<vmem>>, %arg7: memref<64x256xf32, #tpu.memory_space<vmem>>) attributes {dimension_semantics = [], scalar_prefetch = 0 : i64, scratch_operands = 1 : i64, tpu.core_type = #tpu.core_type<tc>} {
    %c0 = arith.constant 0 : index
    %c0_0 = arith.constant 0 : index
    %0 = vector.load %arg0[%c0, %c0_0] : memref<64x8xf32, #tpu.memory_space<vmem>>, vector<64x8xf32>
    %c0_1 = arith.constant 0 : index
    %c0_2 = arith.constant 0 : index
    %1 = vector.load %arg1[%c0_1, %c0_2] : memref<8x256xf32, #tpu.memory_space<vmem>>, vector<8x256xf32>
    %cst = arith.constant dense<0.000000e+00> : vector<64x256xf32>
    %2 = tpu.matmul %0, %1, %cst {dimension_numbers = #tpu.dot_dimension_numbers<[1], [0], [0], [1], [0, 0, 1, 1], [], []>} : vector<64x8xf32>, vector<8x256xf32>, vector<64x256xf32> -> vector<64x256xf32>
    %c0_3 = arith.constant 0 : index
    %c0_4 = arith.constant 0 : index
    %3 = vector.load %arg3[%c0_3, %c0_4] : memref<1x256xf32, #tpu.memory_space<vmem>>, vector<1x256xf32>
    %4 = vector.broadcast %3 : vector<1x256xf32> to vector<64x256xf32>
    %5 = arith.addf %2, %4 : vector<64x256xf32>
    %c0_5 = arith.constant 0 : index
    %c0_6 = arith.constant 0 : index
    %6 = vector.load %arg7[%c0_5, %c0_6] : memref<64x256xf32, #tpu.memory_space<vmem>>, vector<64x256xf32>
    tpu.vector_store %arg7[%c0_5, %c0_6], %5 {strides = array<i32>} : memref<64x256xf32, #tpu.memory_space<vmem>>, vector<64x256xf32>,
    %c0_7 = arith.constant 0 : index
    %c0_8 = arith.constant 0 : index
    %7 = vector.load %arg2[%c0_7, %c0_8] : memref<64x256xf32, #tpu.memory_space<vmem>>, vector<64x256xf32>
    %8 = arith.truncf %7 : vector<64x256xf32> to vector<64x256xbf16>
    %cst_9 = arith.constant 0.000000e+00 : f32
    %9 = vector.broadcast %cst_9 : f32 to vector<8x64xf32>
    %cst_10 = arith.constant 0.000000e+00 : f32
    %10 = vector.broadcast %cst_10 : f32 to vector<8x64xf32>
    %c0_i32 = arith.constant 0 : i32
    %c8_i32 = arith.constant 8 : i32
    %11 = arith.muli %c0_i32, %c8_i32 : i32
    %12 = tpu.assume_multiple %11, 8 : i32
    %13 = arith.index_cast %12 : i32 to index
    %c0_11 = arith.constant 0 : index
    %14 = vector.load %arg7[%13, %c0_11] : memref<64x256xf32, #tpu.memory_space<vmem>>, vector<8x256xf32>
    %15 = arith.truncf %9 : vector<8x64xf32> to vector<8x64xbf16>
    %cst_12 = arith.constant dense<0.000000e+00> : vector<8x256xf32>
    %16 = tpu.matmul %15, %8, %cst_12 {dimension_numbers = #tpu.dot_dimension_numbers<[1], [0], [0], [1], [0, 0, 1, 1], [], []>} : vector<8x64xbf16>, vector<64x256xbf16>, vector<8x256xf32> -> vector<8x256xf32>
    %17 = arith.addf %14, %16 : vector<8x256xf32>
    %18 = arith.negf %17 : vector<8x256xf32>
    %19 = math.exp %18 : vector<8x256xf32>
    %cst_13 = arith.constant 1.000000e+00 : f32
    %20 = vector.broadcast %cst_13 : f32 to vector<8x256xf32>
    %21 = arith.addf %20, %19 : vector<8x256xf32>
    %22 = arith.divf %20, %21 : vector<8x256xf32>
    %23 = vector.extract_strided_slice %22 {offsets = [0, 0], sizes = [8, 64], strides = [1, 1]} : vector<8x256xf32> to vector<8x64xf32>
    %24 = vector.extract_strided_slice %22 {offsets = [0, 64], sizes = [8, 64], strides = [1, 1]} : vector<8x256xf32> to vector<8x64xf32>
    %25 = vector.extract_strided_slice %22 {offsets = [0, 128], sizes = [8, 64], strides = [1, 1]} : vector<8x256xf32> to vector<8x64xf32>
    %cst_14 = arith.constant 2.000000e+00 : f32
    %26 = vector.broadcast %cst_14 : f32 to vector<8x64xf32>
    %27 = arith.mulf %26, %25 : vector<8x64xf32>
    %cst_15 = arith.constant 1.000000e+00 : f32
    %28 = vector.broadcast %cst_15 : f32 to vector<8x64xf32>
    %29 = arith.subf %27, %28 : vector<8x64xf32>
    %30 = vector.extract_strided_slice %22 {offsets = [0, 192], sizes = [8, 64], strides = [1, 1]} : vector<8x256xf32> to vector<8x64xf32>
    %31 = arith.mulf %24, %10 : vector<8x64xf32>
    %32 = arith.mulf %23, %29 : vector<8x64xf32>
    %33 = arith.addf %31, %32 : vector<8x64xf32>
    %34 = math.tanh %33 : vector<8x64xf32>
    %35 = arith.mulf %30, %34 : vector<8x64xf32>
    %c1_i32 = arith.constant 1 : i32
    %c8_i32_16 = arith.constant 8 : i32
    %36 = arith.muli %c1_i32, %c8_i32_16 : i32
    %37 = tpu.assume_multiple %36, 8 : i32
    %38 = arith.index_cast %37 : i32 to index
    %c0_17 = arith.constant 0 : index
    %39 = vector.load %arg7[%38, %c0_17] : memref<64x256xf32, #tpu.memory_space<vmem>>, vector<8x256xf32>
    %40 = arith.truncf %35 : vector<8x64xf32> to vector<8x64xbf16>
    %cst_18 = arith.constant dense<0.000000e+00> : vector<8x256xf32>
    %41 = tpu.matmul %40, %8, %cst_18 {dimension_numbers = #tpu.dot_dimension_numbers<[1], [0], [0], [1], [0, 0, 1, 1], [], []>} : vector<8x64xbf16>, vector<64x256xbf16>, vector<8x256xf32> -> vector<8x256xf32>
    %42 = arith.addf %39, %41 : vector<8x256xf32>
    %43 = arith.negf %42 : vector<8x256xf32>
    %44 = math.exp %43 : vector<8x256xf32>
    %cst_19 = arith.constant 1.000000e+00 : f32
    %45 = vector.broadcast %cst_19 : f32 to vector<8x256xf32>
    %46 = arith.addf %45, %44 : vector<8x256xf32>
    %47 = arith.divf %45, %46 : vector<8x256xf32>
    %48 = vector.extract_strided_slice %47 {offsets = [0, 0], sizes = [8, 64], strides = [1, 1]} : vector<8x256xf32> to vector<8x64xf32>
    %49 = vector.extract_strided_slice %47 {offsets = [0, 64], sizes = [8, 64], strides = [1, 1]} : vector<8x256xf32> to vector<8x64xf32>
    %50 = vector.extract_strided_slice %47 {offsets = [0, 128], sizes = [8, 64], strides = [1, 1]} : vector<8x256xf32> to vector<8x64xf32>
    %cst_20 = arith.constant 2.000000e+00 : f32
    %51 = vector.broadcast %cst_20 : f32 to vector<8x64xf32>
    %52 = arith.mulf %51, %50 : vector<8x64xf32>
    %cst_21 = arith.constant 1.000000e+00 : f32
    %53 = vector.broadcast %cst_21 : f32 to vector<8x64xf32>
    %54 = arith.subf %52, %53 : vector<8x64xf32>
    %55 = vector.extract_strided_slice %47 {offsets = [0, 192], sizes = [8, 64], strides = [1, 1]} : vector<8x256xf32> to vector<8x64xf32>
    %56 = arith.mulf %49, %33 : vector<8x64xf32>
    %57 = arith.mulf %48, %54 : vector<8x64xf32>
    %58 = arith.addf %56, %57 : vector<8x64xf32>
    %59 = math.tanh %58 : vector<8x64xf32>
    %60 = arith.mulf %55, %59 : vector<8x64xf32>
    %c2_i32 = arith.constant 2 : i32
    %c8_i32_22 = arith.constant 8 : i32
    %61 = arith.muli %c2_i32, %c8_i32_22 : i32
    %62 = tpu.assume_multiple %61, 8 : i32
    %63 = arith.index_cast %62 : i32 to index
    %c0_23 = arith.constant 0 : index
    %64 = vector.load %arg7[%63, %c0_23] : memref<64x256xf32, #tpu.memory_space<vmem>>, vector<8x256xf32>
    %65 = arith.truncf %60 : vector<8x64xf32> to vector<8x64xbf16>
    %cst_24 = arith.constant dense<0.000000e+00> : vector<8x256xf32>
    %66 = tpu.matmul %65, %8, %cst_24 {dimension_numbers = #tpu.dot_dimension_numbers<[1], [0], [0], [1], [0, 0, 1, 1], [], []>} : vector<8x64xbf16>, vector<64x256xbf16>, vector<8x256xf32> -> vector<8x256xf32>
    %67 = arith.addf %64, %66 : vector<8x256xf32>
    %68 = arith.negf %67 : vector<8x256xf32>
    %69 = math.exp %68 : vector<8x256xf32>
    %cst_25 = arith.constant 1.000000e+00 : f32
    %70 = vector.broadcast %cst_25 : f32 to vector<8x256xf32>
    %71 = arith.addf %70, %69 : vector<8x256xf32>
    %72 = arith.divf %70, %71 : vector<8x256xf32>
    %73 = vector.extract_strided_slice %72 {offsets = [0, 0], sizes = [8, 64], strides = [1, 1]} : vector<8x256xf32> to vector<8x64xf32>
    %74 = vector.extract_strided_slice %72 {offsets = [0, 64], sizes = [8, 64], strides = [1, 1]} : vector<8x256xf32> to vector<8x64xf32>
    %75 = vector.extract_strided_slice %72 {offsets = [0, 128], sizes = [8, 64], strides = [1, 1]} : vector<8x256xf32> to vector<8x64xf32>
    %cst_26 = arith.constant 2.000000e+00 : f32
    %76 = vector.broadcast %cst_26 : f32 to vector<8x64xf32>
    %77 = arith.mulf %76, %75 : vector<8x64xf32>
    %cst_27 = arith.constant 1.000000e+00 : f32
    %78 = vector.broadcast %cst_27 : f32 to vector<8x64xf32>
    %79 = arith.subf %77, %78 : vector<8x64xf32>
    %80 = vector.extract_strided_slice %72 {offsets = [0, 192], sizes = [8, 64], strides = [1, 1]} : vector<8x256xf32> to vector<8x64xf32>
    %81 = arith.mulf %74, %58 : vector<8x64xf32>
    %82 = arith.mulf %73, %79 : vector<8x64xf32>
    %83 = arith.addf %81, %82 : vector<8x64xf32>
    %84 = math.tanh %83 : vector<8x64xf32>
    %85 = arith.mulf %80, %84 : vector<8x64xf32>
    %c3_i32 = arith.constant 3 : i32
    %c8_i32_28 = arith.constant 8 : i32
    %86 = arith.muli %c3_i32, %c8_i32_28 : i32
    %87 = tpu.assume_multiple %86, 8 : i32
    %88 = arith.index_cast %87 : i32 to index
    %c0_29 = arith.constant 0 : index
    %89 = vector.load %arg7[%88, %c0_29] : memref<64x256xf32, #tpu.memory_space<vmem>>, vector<8x256xf32>
    %90 = arith.truncf %85 : vector<8x64xf32> to vector<8x64xbf16>
    %cst_30 = arith.constant dense<0.000000e+00> : vector<8x256xf32>
    %91 = tpu.matmul %90, %8, %cst_30 {dimension_numbers = #tpu.dot_dimension_numbers<[1], [0], [0], [1], [0, 0, 1, 1], [], []>} : vector<8x64xbf16>, vector<64x256xbf16>, vector<8x256xf32> -> vector<8x256xf32>
    %92 = arith.addf %89, %91 : vector<8x256xf32>
    %93 = arith.negf %92 : vector<8x256xf32>
    %94 = math.exp %93 : vector<8x256xf32>
    %cst_31 = arith.constant 1.000000e+00 : f32
    %95 = vector.broadcast %cst_31 : f32 to vector<8x256xf32>
    %96 = arith.addf %95, %94 : vector<8x256xf32>
    %97 = arith.divf %95, %96 : vector<8x256xf32>
    %98 = vector.extract_strided_slice %97 {offsets = [0, 0], sizes = [8, 64], strides = [1, 1]} : vector<8x256xf32> to vector<8x64xf32>
    %99 = vector.extract_strided_slice %97 {offsets = [0, 64], sizes = [8, 64], strides = [1, 1]} : vector<8x256xf32> to vector<8x64xf32>
    %100 = vector.extract_strided_slice %97 {offsets = [0, 128], sizes = [8, 64], strides = [1, 1]} : vector<8x256xf32> to vector<8x64xf32>
    %cst_32 = arith.constant 2.000000e+00 : f32
    %101 = vector.broadcast %cst_32 : f32 to vector<8x64xf32>
    %102 = arith.mulf %101, %100 : vector<8x64xf32>
    %cst_33 = arith.constant 1.000000e+00 : f32
    %103 = vector.broadcast %cst_33 : f32 to vector<8x64xf32>
    %104 = arith.subf %102, %103 : vector<8x64xf32>
    %105 = vector.extract_strided_slice %97 {offsets = [0, 192], sizes = [8, 64], strides = [1, 1]} : vector<8x256xf32> to vector<8x64xf32>
    %106 = arith.mulf %99, %83 : vector<8x64xf32>
    %107 = arith.mulf %98, %104 : vector<8x64xf32>
    %108 = arith.addf %106, %107 : vector<8x64xf32>
    %109 = math.tanh %108 : vector<8x64xf32>
    %110 = arith.mulf %105, %109 : vector<8x64xf32>
    %c4_i32 = arith.constant 4 : i32
    %c8_i32_34 = arith.constant 8 : i32
    %111 = arith.muli %c4_i32, %c8_i32_34 : i32
    %112 = tpu.assume_multiple %111, 8 : i32
    %113 = arith.index_cast %112 : i32 to index
    %c0_35 = arith.constant 0 : index
    %114 = vector.load %arg7[%113, %c0_35] : memref<64x256xf32, #tpu.memory_space<vmem>>, vector<8x256xf32>
    %115 = arith.truncf %110 : vector<8x64xf32> to vector<8x64xbf16>
    %cst_36 = arith.constant dense<0.000000e+00> : vector<8x256xf32>
    %116 = tpu.matmul %115, %8, %cst_36 {dimension_numbers = #tpu.dot_dimension_numbers<[1], [0], [0], [1], [0, 0, 1, 1], [], []>} : vector<8x64xbf16>, vector<64x256xbf16>, vector<8x256xf32> -> vector<8x256xf32>
    %117 = arith.addf %114, %116 : vector<8x256xf32>
    %118 = arith.negf %117 : vector<8x256xf32>
    %119 = math.exp %118 : vector<8x256xf32>
    %cst_37 = arith.constant 1.000000e+00 : f32
    %120 = vector.broadcast %cst_37 : f32 to vector<8x256xf32>
    %121 = arith.addf %120, %119 : vector<8x256xf32>
    %122 = arith.divf %120, %121 : vector<8x256xf32>
    %123 = vector.extract_strided_slice %122 {offsets = [0, 0], sizes = [8, 64], strides = [1, 1]} : vector<8x256xf32> to vector<8x64xf32>
    %124 = vector.extract_strided_slice %122 {offsets = [0, 64], sizes = [8, 64], strides = [1, 1]} : vector<8x256xf32> to vector<8x64xf32>
    %125 = vector.extract_strided_slice %122 {offsets = [0, 128], sizes = [8, 64], strides = [1, 1]} : vector<8x256xf32> to vector<8x64xf32>
    %cst_38 = arith.constant 2.000000e+00 : f32
    %126 = vector.broadcast %cst_38 : f32 to vector<8x64xf32>
    %127 = arith.mulf %126, %125 : vector<8x64xf32>
    %cst_39 = arith.constant 1.000000e+00 : f32
    %128 = vector.broadcast %cst_39 : f32 to vector<8x64xf32>
    %129 = arith.subf %127, %128 : vector<8x64xf32>
    %130 = vector.extract_strided_slice %122 {offsets = [0, 192], sizes = [8, 64], strides = [1, 1]} : vector<8x256xf32> to vector<8x64xf32>
    %131 = arith.mulf %124, %108 : vector<8x64xf32>
    %132 = arith.mulf %123, %129 : vector<8x64xf32>
    %133 = arith.addf %131, %132 : vector<8x64xf32>
    %134 = math.tanh %133 : vector<8x64xf32>
    %135 = arith.mulf %130, %134 : vector<8x64xf32>
    %c5_i32 = arith.constant 5 : i32
    %c8_i32_40 = arith.constant 8 : i32
    %136 = arith.muli %c5_i32, %c8_i32_40 : i32
    %137 = tpu.assume_multiple %136, 8 : i32
    %138 = arith.index_cast %137 : i32 to index
    %c0_41 = arith.constant 0 : index
    %139 = vector.load %arg7[%138, %c0_41] : memref<64x256xf32, #tpu.memory_space<vmem>>, vector<8x256xf32>
    %140 = arith.truncf %135 : vector<8x64xf32> to vector<8x64xbf16>
    %cst_42 = arith.constant dense<0.000000e+00> : vector<8x256xf32>
    %141 = tpu.matmul %140, %8, %cst_42 {dimension_numbers = #tpu.dot_dimension_numbers<[1], [0], [0], [1], [0, 0, 1, 1], [], []>} : vector<8x64xbf16>, vector<64x256xbf16>, vector<8x256xf32> -> vector<8x256xf32>
    %142 = arith.addf %139, %141 : vector<8x256xf32>
    %143 = arith.negf %142 : vector<8x256xf32>
    %144 = math.exp %143 : vector<8x256xf32>
    %cst_43 = arith.constant 1.000000e+00 : f32
    %145 = vector.broadcast %cst_43 : f32 to vector<8x256xf32>
    %146 = arith.addf %145, %144 : vector<8x256xf32>
    %147 = arith.divf %145, %146 : vector<8x256xf32>
    %148 = vector.extract_strided_slice %147 {offsets = [0, 0], sizes = [8, 64], strides = [1, 1]} : vector<8x256xf32> to vector<8x64xf32>
    %149 = vector.extract_strided_slice %147 {offsets = [0, 64], sizes = [8, 64], strides = [1, 1]} : vector<8x256xf32> to vector<8x64xf32>
    %150 = vector.extract_strided_slice %147 {offsets = [0, 128], sizes = [8, 64], strides = [1, 1]} : vector<8x256xf32> to vector<8x64xf32>
    %cst_44 = arith.constant 2.000000e+00 : f32
    %151 = vector.broadcast %cst_44 : f32 to vector<8x64xf32>
    %152 = arith.mulf %151, %150 : vector<8x64xf32>
    %cst_45 = arith.constant 1.000000e+00 : f32
    %153 = vector.broadcast %cst_45 : f32 to vector<8x64xf32>
    %154 = arith.subf %152, %153 : vector<8x64xf32>
    %155 = vector.extract_strided_slice %147 {offsets = [0, 192], sizes = [8, 64], strides = [1, 1]} : vector<8x256xf32> to vector<8x64xf32>
    %156 = arith.mulf %149, %133 : vector<8x64xf32>
    %157 = arith.mulf %148, %154 : vector<8x64xf32>
    %158 = arith.addf %156, %157 : vector<8x64xf32>
    %159 = math.tanh %158 : vector<8x64xf32>
    %160 = arith.mulf %155, %159 : vector<8x64xf32>
    %c6_i32 = arith.constant 6 : i32
    %c8_i32_46 = arith.constant 8 : i32
    %161 = arith.muli %c6_i32, %c8_i32_46 : i32
    %162 = tpu.assume_multiple %161, 8 : i32
    %163 = arith.index_cast %162 : i32 to index
    %c0_47 = arith.constant 0 : index
    %164 = vector.load %arg7[%163, %c0_47] : memref<64x256xf32, #tpu.memory_space<vmem>>, vector<8x256xf32>
    %165 = arith.truncf %160 : vector<8x64xf32> to vector<8x64xbf16>
    %cst_48 = arith.constant dense<0.000000e+00> : vector<8x256xf32>
    %166 = tpu.matmul %165, %8, %cst_48 {dimension_numbers = #tpu.dot_dimension_numbers<[1], [0], [0], [1], [0, 0, 1, 1], [], []>} : vector<8x64xbf16>, vector<64x256xbf16>, vector<8x256xf32> -> vector<8x256xf32>
    %167 = arith.addf %164, %166 : vector<8x256xf32>
    %168 = arith.negf %167 : vector<8x256xf32>
    %169 = math.exp %168 : vector<8x256xf32>
    %cst_49 = arith.constant 1.000000e+00 : f32
    %170 = vector.broadcast %cst_49 : f32 to vector<8x256xf32>
    %171 = arith.addf %170, %169 : vector<8x256xf32>
    %172 = arith.divf %170, %171 : vector<8x256xf32>
    %173 = vector.extract_strided_slice %172 {offsets = [0, 0], sizes = [8, 64], strides = [1, 1]} : vector<8x256xf32> to vector<8x64xf32>
    %174 = vector.extract_strided_slice %172 {offsets = [0, 64], sizes = [8, 64], strides = [1, 1]} : vector<8x256xf32> to vector<8x64xf32>
    %175 = vector.extract_strided_slice %172 {offsets = [0, 128], sizes = [8, 64], strides = [1, 1]} : vector<8x256xf32> to vector<8x64xf32>
    %cst_50 = arith.constant 2.000000e+00 : f32
    %176 = vector.broadcast %cst_50 : f32 to vector<8x64xf32>
    %177 = arith.mulf %176, %175 : vector<8x64xf32>
    %cst_51 = arith.constant 1.000000e+00 : f32
    %178 = vector.broadcast %cst_51 : f32 to vector<8x64xf32>
    %179 = arith.subf %177, %178 : vector<8x64xf32>
    %180 = vector.extract_strided_slice %172 {offsets = [0, 192], sizes = [8, 64], strides = [1, 1]} : vector<8x256xf32> to vector<8x64xf32>
    %181 = arith.mulf %174, %158 : vector<8x64xf32>
    %182 = arith.mulf %173, %179 : vector<8x64xf32>
    %183 = arith.addf %181, %182 : vector<8x64xf32>
    %184 = math.tanh %183 : vector<8x64xf32>
    %185 = arith.mulf %180, %184 : vector<8x64xf32>
    %c7_i32 = arith.constant 7 : i32
    %c8_i32_52 = arith.constant 8 : i32
    %186 = arith.muli %c7_i32, %c8_i32_52 : i32
    %187 = tpu.assume_multiple %186, 8 : i32
    %188 = arith.index_cast %187 : i32 to index
    %c0_53 = arith.constant 0 : index
    %189 = vector.load %arg7[%188, %c0_53] : memref<64x256xf32, #tpu.memory_space<vmem>>, vector<8x256xf32>
    %190 = arith.truncf %185 : vector<8x64xf32> to vector<8x64xbf16>
    %cst_54 = arith.constant dense<0.000000e+00> : vector<8x256xf32>
    %191 = tpu.matmul %190, %8, %cst_54 {dimension_numbers = #tpu.dot_dimension_numbers<[1], [0], [0], [1], [0, 0, 1, 1], [], []>} : vector<8x64xbf16>, vector<64x256xbf16>, vector<8x256xf32> -> vector<8x256xf32>
    %192 = arith.addf %189, %191 : vector<8x256xf32>
    %193 = arith.negf %192 : vector<8x256xf32>
    %194 = math.exp %193 : vector<8x256xf32>
    %cst_55 = arith.constant 1.000000e+00 : f32
    %195 = vector.broadcast %cst_55 : f32 to vector<8x256xf32>
    %196 = arith.addf %195, %194 : vector<8x256xf32>
    %197 = arith.divf %195, %196 : vector<8x256xf32>
    %198 = vector.extract_strided_slice %197 {offsets = [0, 0], sizes = [8, 64], strides = [1, 1]} : vector<8x256xf32> to vector<8x64xf32>
    %199 = vector.extract_strided_slice %197 {offsets = [0, 64], sizes = [8, 64], strides = [1, 1]} : vector<8x256xf32> to vector<8x64xf32>
    %200 = vector.extract_strided_slice %197 {offsets = [0, 128], sizes = [8, 64], strides = [1, 1]} : vector<8x256xf32> to vector<8x64xf32>
    %cst_56 = arith.constant 2.000000e+00 : f32
    %201 = vector.broadcast %cst_56 : f32 to vector<8x64xf32>
    %202 = arith.mulf %201, %200 : vector<8x64xf32>
    %cst_57 = arith.constant 1.000000e+00 : f32
    %203 = vector.broadcast %cst_57 : f32 to vector<8x64xf32>
    %204 = arith.subf %202, %203 : vector<8x64xf32>
    %205 = vector.extract_strided_slice %197 {offsets = [0, 192], sizes = [8, 64], strides = [1, 1]} : vector<8x256xf32> to vector<8x64xf32>
    %206 = arith.mulf %199, %183 : vector<8x64xf32>
    %207 = arith.mulf %198, %204 : vector<8x64xf32>
    %208 = arith.addf %206, %207 : vector<8x64xf32>
    %209 = math.tanh %208 : vector<8x64xf32>
    %210 = arith.mulf %205, %209 : vector<8x64xf32>
    %c8_i32_58 = arith.constant 8 : i32
    %c0_59 = arith.constant 0 : index
    %c0_60 = arith.constant 0 : index
    %211 = vector.load %arg4[%c0_59, %c0_60] : memref<64x3xf32, #tpu.memory_space<vmem>>, vector<64x3xf32>
    %cst_61 = arith.constant dense<0.000000e+00> : vector<8x3xf32>
    %212 = tpu.matmul %210, %211, %cst_61 {dimension_numbers = #tpu.dot_dimension_numbers<[1], [0], [0], [1], [0, 0, 1, 1], [], []>} : vector<8x64xf32>, vector<64x3xf32>, vector<8x3xf32> -> vector<8x3xf32>
    %c0_62 = arith.constant 0 : index
    %c0_63 = arith.constant 0 : index
    %213 = vector.load %arg5[%c0_62, %c0_63] : memref<1x3xf32, #tpu.memory_space<vmem>>, vector<1x3xf32>
    %214 = vector.broadcast %213 : vector<1x3xf32> to vector<8x3xf32>
    %215 = arith.addf %212, %214 : vector<8x3xf32>
    %c0_64 = arith.constant 0 : index
    %c0_65 = arith.constant 0 : index
    %216 = vector.load %arg6[%c0_64, %c0_65] : memref<8x3xf32, #tpu.memory_space<vmem>>, vector<8x3xf32>
    tpu.vector_store %arg6[%c0_64, %c0_65], %215 {strides = array<i32>} : memref<8x3xf32, #tpu.memory_space<vmem>>, vector<8x3xf32>,
    return
  }
}

</mosaic_0001>

<bundles_post_ra>
// kernel: tpu_custom_call.1
= control target key start
LH: loop header
LB: loop body
LE: loop exit
PB: predicated region body
PF: predicated region fallthrough
CT: control target
= control target key end

     0   :  { %11 = vsyncpa [#allocation4], 0  ;;  %s1137_s21 = smov [#allocation3]   ;;  %s1467_s0 = inlined_call_operand.vmem [shape: f32[64,8], index: 0, kind: input, shape index: {}]   ;;  %s1468_s1 = inlined_call_operand.hbm [shape: f32[8,256], index: 1, kind: input, shape index: {}]   ;;  %s1469_s2 = inlined_call_operand.vmem [shape: f32[64,256], index: 2, kind: input, shape index: {}]   ;;  %s1470_s3 = inlined_call_operand.vmem [shape: f32[1,256], index: 3, kind: input, shape index: {}]   ;;  %s1471_s4 = inlined_call_operand.vmem [shape: f32[64,3], index: 4, kind: input, shape index: {}]   ;;  %s1472_s5 = inlined_call_operand.vmem [shape: f32[1,3], index: 5, kind: input, shape index: {}]   ;;  %s1473_s6 = inlined_call_operand.vmem [shape: f32[8,3], index: 6, kind: output, shape index: {}]  }
   0x1   :  { %s20_s22 = sshll.u32 %s1137_s21, 4  ;;  %s21_s22 = int_to_ptr.vmem [resolvable:$true] %s20_s22 }
   0x2   :  { %s1123_s23 = scalar_lea.vmem %s21_s22, 256  ;;  %p1128_p1 = scmp.lt.s32.totalorder %s21_s22, %s21_s22 }
   0x3   :  { %p1124_p0 = scmp.ne.s32.totalorder %s21_s22, %s1123_s23  ;;  %p1129_p2 = scmp.lt.s32.totalorder %s1123_s23, %s1123_s23 }
   0x5   :  { %p1130_p3 = por %p1129_p2, %p1128_p1 }
   0x7   :  { %p1131_p4 = pnand %p1130_p3, %p1124_p0 }
   0x9   :  { %1134 = shalt.err (!%p1131_p4)
}
   0xa   :  { %23 = dma.hbm_to_vmem [thread:$0]  %s1468_s1, 256, %s21_s22, [#allocation4]  }
   0xb   :  { %1135 = dma.done.wait [#allocation4], 256  }
   0xc   :  { %1136 = vsyncadd [#allocation4], 4294967040  ;;  %v1138_v0 = vmov 0.0   ;;  %v1139_v1 = vmov 0   ;;  %v225_v2 = vld [vmem:[%s1469_s2 + $0x68] sm:$0xff]  ;;  %v227_v3 = vld [vmem:[%s1469_s2 + $0x78] sm:$0xff]  ;;  %v48_v29 = vlaneseq }
   0xd   :  { %147 = vmatprep.mubr.f32.mxu0 %v1138_v0  ;;  %277 = vmatprep.mubr.bf16.mxu1 %v1139_v1  ;;  %v224_v4 = vld [vmem:[%s1469_s2 + $0x60] sm:$0xff]  ;;  %v1191_v5 = vpack.c.bf16 %v227_v3, %v225_v2  ;;  %v226_v6 = vld [vmem:[%s1469_s2 + $0x70] sm:$0xff]  ;;  %v221_v7 = vld [vmem:[%s1469_s2 + $0x48] sm:$0xff]  ;;  %vm58_vm0 = vcmask 64512   ;;  %vm241_vm1 = vcmask 523264   ;;  %vm1141_vm2 = vmmov 0  }
   0xe   :  { %v223_v8 = vld [vmem:[%s1469_s2 + $0x58] sm:$0xff]  ;;  %v1202_v9 = vpack.c.bf16 %v226_v6, %v224_v4  ;;  %v220_v11 = vld [vmem:[%s1469_s2 + $0x40] sm:$0xff]  ;;  %v222_v12 = vld [vmem:[%s1469_s2 + $0x50] sm:$0xff]  ;;  %v49_v30 = vshrl.u32 %v48_v29, 7  ;;  %vm947_vm3 = vcmask 23552  }
   0xf   :  { %v1204_v10 = vpack.c.bf16 %v223_v8, %v221_v7  ;;  %v217_v13 = vld [vmem:[%s1469_s2 + $0x28] sm:$0xff]  ;;  %253 = vmatprep.subr.bf16.mxu1 %v1191_v5  ;;  %v219_v14 = vld [vmem:[%s1469_s2 + $0x38] sm:$0xff]  ;;  %v1220_v15 = vpack.c.bf16 %v222_v12, %v220_v11  ;;  %v44_v17 = vld [vmem:[#allocation3] sm:$0xff] }
  0x10   :  { %254 = vmatpush1.bf16.msra.mxu1 %v1202_v9  ;;  %v45_v16 = vld [vmem:[#allocation3 + $0x8] sm:$0xff]  ;;  %v36_v18 = vld [vmem:[%s1467_s0] sm:$0xff]  ;;  %v1226_v19 = vpack.c.bf16 %v219_v14, %v217_v13  ;;  %v218_v21 = vld [vmem:[%s1469_s2 + $0x30] sm:$0xff]  ;;  %v50_v31 = vsub.s32 0, %v49_v30  ;;  %v54_v34 = vsub.s32 1, %v49_v30 }
  0x11   :  { %255 = vmatprep.subr.bf16.mxu1 %v1204_v10  ;;  %v216_v20 = vld [vmem:[%s1469_s2 + $0x20] sm:$0xff]  ;;  %113 = vmatprep.subr.mxu0 %v45_v16  ;;  %v213_v22 = vld [vmem:[%s1469_s2 + $0x8] sm:$0xff]  ;;  %v215_v23 = vld [vmem:[%s1469_s2 + $0x18] sm:$0xff] }
  0x12   :  { %114 = vmatpush1.msra.mxu0 %v44_v17  ;;  %v1243_v24 = vpack.c.bf16 %v218_v21, %v216_v20  ;;  %v1247_v25 = vpack.c.bf16 %v215_v23, %v213_v22  ;;  %v212_v26 = vld [vmem:[%s1469_s2] sm:$0xff]  ;;  %v214_v27 = vld [vmem:[%s1469_s2 + $0x10] sm:$0xff]  ;;  %v37_v57 = vld [vmem:[%s1467_s0 + $0x8] sm:$0xff] }
  0x13   :  { %961 = vmatmul.mubr.msk.f32.vlgmr.msra.gmra.mxu0 %vm58_vm0, %v36_v18  ;;  %409 = vmatprep.subr.bf16.mxu0 %v1191_v5  ;;  %v1258_v28 = vpack.c.bf16 %v214_v27, %v212_v26  ;;  %v46_v32 = vld [vmem:[%s1470_s3] sm:$0x3]  ;;  %s1140_s3 = smov 64  }
  0x14   :  { %256 = vmatpush1.bf16.msra.mxu1 %v1220_v15  ;;  %153 = vmatprep.mubr.f32.mxu0 %v1138_v0  ;;  %v1282_v33 = vrot.slane %v46_v32, %v50_v31  ;;  %v1285_v37 = vrot.slane %v46_v32, %v54_v34  ;;  %v38_v32 = vld [vmem:[%s1467_s0 + $0x10] sm:$0xff]  ;;  %v39_v34 = vld [vmem:[%s1467_s0 + $0x18] sm:$0xff] }
  0x15   :  { %257 = vmatprep.subr.bf16.mxu1 %v1226_v19  ;;  %410 = vmatpush1.bf16.msra.mxu0 %v1202_v9 }
  0x16   :  { %411 = vmatprep.subr.bf16.mxu0 %v1204_v10 }
  0x17   :  { %962 = vmatmul.mubr.msk.f32.gmra.mxu0 %vm58_vm0, %v37_v57 }
  0x18   :  { %258 = vmatpush1.bf16.msra.mxu1 %v1243_v24  ;;  %159 = vmatprep.mubr.f32.mxu0 %v1138_v0 }
  0x19   :  { %259 = vmatprep.subr.bf16.mxu1 %v1247_v25  ;;  %412 = vmatpush1.bf16.msra.mxu0 %v1220_v15 }
  0x1a   :  { %413 = vmatprep.subr.bf16.mxu0 %v1226_v19 }
  0x1b   :  { %963 = vmatmul.mubr.msk.f32.gmra.mxu0 %vm58_vm0, %v38_v32 }
  0x1c   :  { %260 = vmatpush1.bf16.msra.mxu1 %v1258_v28  ;;  %165 = vmatprep.mubr.f32.mxu0 %v1138_v0 }
  0x1d   :  { %331 = vmatprep.subr.bf16.mxu1 %v1191_v5  ;;  %414 = vmatpush1.bf16.msra.mxu0 %v1243_v24 }
  0x1e   :  { %415 = vmatprep.subr.bf16.mxu0 %v1247_v25 }
  0x1f   :  { %278 = vmatmul.mubr.bf16.vlgmr.msra.gmra.mxu1 %v1139_v1  ;;  %964 = vmatmul.mubr.msk.f32.gmra.mxu0 %vm58_vm0, %v39_v34 }
  0x20   :  { %332 = vmatpush1.bf16.msra.mxu1 %v1202_v9  ;;  %355 = vmatprep.mubr.bf16.mxu1 %v1139_v1 }
  0x21   :  { %333 = vmatprep.subr.bf16.mxu1 %v1204_v10  ;;  %416 = vmatpush1.bf16.msra.mxu0 %v1258_v28 }
  0x22   :  { %565 = vmatprep.subr.bf16.mxu0 %v1191_v5  ;;  %171 = vmatprep.mubr.f32.mxu0 %v1138_v0 }
  0x24   :  { %334 = vmatpush1.bf16.msra.mxu1 %v1220_v15 }
  0x25   :  { %335 = vmatprep.subr.bf16.mxu1 %v1226_v19 }
  0x28   :  { %336 = vmatpush1.bf16.msra.mxu1 %v1243_v24 }
  0x29   :  { %337 = vmatprep.subr.bf16.mxu1 %v1247_v25 }
  0x2c   :  { %338 = vmatpush1.bf16.msra.mxu1 %v1258_v28 }
  0x2d   :  { %487 = vmatprep.subr.bf16.mxu1 %v1191_v5 }
  0xd3   :  { %v149_v35 = vpop.f32.mrf.mxu0 }
  0xd4   :  { %v150_v36 = vadd.f32 %v149_v35, %v1282_v33  ;;  %v40_v35 = vld [vmem:[%s1467_s0 + $0x20] sm:$0xff] }
  0xd5   :  { %v151_v38 = vpop.f32.mrf.mxu0  ;;  %965 = vmatmul.mubr.msk.f32.gmra.mxu0 %vm58_vm0, %v40_v35 }
  0xd6   :  { %v152_v40 = vadd.f32 %v151_v38, %v1285_v37  ;;  %177 = vmatprep.mubr.f32.mxu0 %v1138_v0  ;;  %v42_v38 = vld [vmem:[%s1467_s0 + $0x30] sm:$0xff] }
  0xd7   :  { %v155_v3 = vpop.f32.mrf.mxu0 }
  0xd8   :  { %v156_v4 = vadd.f32 %v155_v3, %v1282_v33 }
  0xd9   :  { %v157_v6 = vpop.f32.mrf.mxu0 }
  0xda   :  { %v158_v8 = vadd.f32 %v157_v6, %v1285_v37 }
  0xdf   :  { %v279_v39 = vpop.f32.mrf.mxu1 }
  0xe0   :  { %v286_v41 = vadd.f32 %v279_v39, %v150_v36  ;;  %v41_v36 = vld [vmem:[%s1467_s0 + $0x28] sm:$0xff]  ;;  %v43_v39 = vld [vmem:[%s1467_s0 + $0x38] sm:$0xff] }
  0xe1   :  { %v281_v42 = vpop.f32.mrf.mxu1  ;;  %966 = vmatmul.mubr.msk.f32.gmra.mxu0 %vm58_vm0, %v41_v36 }
  0xe2   :  { %v969_v43 = vmul.f32 -1.442695, %v286_v41  ;;  %v287_v44 = vadd.f32 %v281_v42, %v152_v40  ;;  %183 = vmatprep.mubr.f32.mxu0 %v1138_v0 }
  0xe3   :  { %v283_v45 = vpop.f32.mrf.mxu1 }
  0xe4   :  { %v970_v46 = vmul.f32 -1.442695, %v287_v44  ;;  %1035 = vpow2.f32 %v969_v43 }
  0xe5   :  { %v284_v47 = vpop.f32.mrf.mxu1  ;;  %967 = vmatmul.mubr.msk.f32.gmra.mxu0 %vm58_vm0, %v42_v38 }
  0xe6   :  { %1037 = vpow2.f32 %v970_v46  ;;  %189 = vmatprep.mubr.f32.mxu0 %v1138_v0  ;;  %v161_v47 = vpop.f32.mrf.mxu0 }
  0xe9   :  { %968 = vmatmul.mubr.msk.f32.gmra.mxu0 %vm58_vm0, %v43_v39 }
  0xea   :  { %433 = vmatprep.mubr.bf16.mxu0 %v1139_v1 }
  0xf1   :  { %v1036_v48 = vpop.eup %1035 }
  0xf2   :  { %v294_v51 = vadd.f32 1.0, %v1036_v48  ;;  %v163_v48 = vpop.f32.mrf.mxu0 }
  0xf3   :  { %v1038_v49 = vpop.eup %1037 }
  0xf4   :  { %v295_v50 = vadd.f32 1.0, %v1038_v49  ;;  %v167_v49 = vpop.f32.mrf.mxu0 }
  0xf6   :  { %1039 = vrcp.f32 %v295_v50  ;;  %v169_v50 = vpop.f32.mrf.mxu0 }
  0xf7   :  { %1041 = vrcp.f32 %v294_v51  ;;  %v170_v34 = vadd.f32 %v169_v50, %v1285_v37 }
 0x103   :  { %v1040_v52 = vpop.eup %1039 }
 0x104   :  { %v300_v53 = vmul.f32 2.0, %v1040_v52  ;;  %v1042_v55 = vpop.eup %1041 }
 0x105   :  { %v302_v58 = vmul.f32 0.0, %v1042_v55 }
 0x106   :  { %v971_v54 = vadd.f32 -1.0, %v300_v53 }
 0x108   :  { %v303_v56 = vmul.f32 %v1042_v55, %v971_v54 }
 0x10a   :  { %305 = vrot.lane.b32.xlu0 %v303_v56, %s1140_s3 }
 0x17c   :  { %v306_v59 = vpop.permute.xlu0 %305 }
 0x17d   :  { %v308_v60 = vadd.f32 %v306_v59, %v302_v58  ;;  %v162_v59 = vadd.f32 %v161_v47, %v1282_v33 }
 0x17f   :  { %1043 = vtanh.f32 %v308_v60 }
 0x18c   :  { %v1044_v61 = vpop.eup %1043 }
 0x18d   :  { %v310_v62 = vmul.f32 %v1044_v61, %v1040_v52  ;;  %v164_v61 = vadd.f32 %v163_v48, %v1285_v37 }
 0x18f   :  { %v316_v63 = vpack.c.bf16 %v310_v62, %v310_v62 }
 0x191   :  { %318 = vrot.lane.b32.xlu0 %v316_v63, %s1140_s3 }
 0x195   :  { %v1349_v51 = vpop.f32.mrf.mxu0 }
 0x197   :  { %v1351_v52 = vpop.f32.mrf.mxu0 }
 0x1a1   :  { %v1353_v53 = vpop.f32.mrf.mxu0 }
 0x1a3   :  { %v1355_v54 = vpop.f32.mrf.mxu0 }
 0x1a5   :  { %v1357_v55 = vpop.f32.mrf.mxu0 }
 0x1a7   :  { %v1359_v56 = vpop.f32.mrf.mxu0 }
 0x1a9   :  { %v1361_v57 = vpop.f32.mrf.mxu0 }
 0x1ab   :  { %v1363_v58 = vpop.f32.mrf.mxu0 }
 0x203   :  { %v319_v2 = vpop.permute.xlu0 %318 }
 0x204   :  { %972 = vmatmul.mubr.msk.bf16.vlgmr.msra.gmra.mxu1 %vm241_vm1, %v319_v2 }
 0x205   :  { %488 = vmatpush1.bf16.msra.mxu1 %v1202_v9  ;;  %511 = vmatprep.mubr.bf16.mxu1 %v1139_v1 }
 0x206   :  { %489 = vmatprep.subr.bf16.mxu1 %v1204_v10 }
 0x209   :  { %490 = vmatpush1.bf16.msra.mxu1 %v1220_v15 }
 0x20a   :  { %491 = vmatprep.subr.bf16.mxu1 %v1226_v19 }
 0x20d   :  { %492 = vmatpush1.bf16.msra.mxu1 %v1243_v24 }
 0x20e   :  { %493 = vmatprep.subr.bf16.mxu1 %v1247_v25 }
 0x211   :  { %494 = vmatpush1.bf16.msra.mxu1 %v1258_v28 }
 0x212   :  { %643 = vmatprep.subr.bf16.mxu1 %v1191_v5 }
 0x2c4   :  { %v357_v7 = vpop.f32.mrf.mxu1 }
 0x2c5   :  { %v364_v11 = vadd.f32 %v357_v7, %v156_v4 }
 0x2c6   :  { %v359_v12 = vpop.f32.mrf.mxu1 }
 0x2c7   :  { %v973_v13 = vmul.f32 -1.442695, %v364_v11  ;;  %v365_v14 = vadd.f32 %v359_v12, %v158_v8 }
 0x2c8   :  { %v361_v16 = vpop.f32.mrf.mxu1 }
 0x2c9   :  { %v974_v17 = vmul.f32 -1.442695, %v365_v14  ;;  %1045 = vpow2.f32 %v973_v13 }
 0x2ca   :  { %v362_v18 = vpop.f32.mrf.mxu1 }
 0x2cb   :  { %1047 = vpow2.f32 %v974_v17 }
 0x2d6   :  { %v1046_v20 = vpop.eup %1045 }
 0x2d7   :  { %v372_v23 = vadd.f32 1.0, %v1046_v20 }
 0x2d8   :  { %v1048_v21 = vpop.eup %1047 }
 0x2d9   :  { %v373_v22 = vadd.f32 1.0, %v1048_v21 }
 0x2db   :  { %1049 = vrcp.f32 %v373_v22 }
 0x2dc   :  { %1051 = vrcp.f32 %v372_v23 }
 0x2e8   :  { %v1050_v26 = vpop.eup %1049 }
 0x2e9   :  { %v378_v27 = vmul.f32 2.0, %v1050_v26  ;;  %v1052_v30 = vpop.eup %1051 }
 0x2ea   :  { %v380_v40 = vmul.f32 %v1052_v30, %v308_v60 }
 0x2eb   :  { %v975_v29 = vadd.f32 -1.0, %v378_v27 }
 0x2ed   :  { %v381_v31 = vmul.f32 %v1052_v30, %v975_v29 }
 0x2ef   :  { %383 = vrot.lane.b32.xlu1 %v381_v31, %s1140_s3  ;;  %v168_v31 = vadd.f32 %v167_v49, %v1282_v33 }
 0x361   :  { %v384_v41 = vpop.permute.xlu1 %383 }
 0x362   :  { %v386_v42 = vadd.f32 %v384_v41, %v380_v40 }
 0x364   :  { %1053 = vtanh.f32 %v386_v42 }
 0x371   :  { %v1054_v43 = vpop.eup %1053 }
 0x372   :  { %v388_v44 = vmul.f32 %v1054_v43, %v1050_v26 }
 0x374   :  { %v394_v45 = vpack.c.bf16 %v388_v44, %v388_v44 }
 0x376   :  { %396 = vrot.lane.b32.xlu1 %v394_v45, %s1140_s3 }
 0x3e8   :  { %v397_v46 = vpop.permute.xlu1 %396 }
 0x3e9   :  { %976 = vmatmul.mubr.msk.bf16.vlgmr.msra.gmra.mxu0 %vm241_vm1, %v397_v46 }
 0x3ea   :  { %566 = vmatpush1.bf16.msra.mxu0 %v1202_v9  ;;  %589 = vmatprep.mubr.bf16.mxu0 %v1139_v1 }
 0x3eb   :  { %567 = vmatprep.subr.bf16.mxu0 %v1204_v10 }
 0x3ee   :  { %568 = vmatpush1.bf16.msra.mxu0 %v1220_v15 }
 0x3ef   :  { %569 = vmatprep.subr.bf16.mxu0 %v1226_v19 }
 0x3f2   :  { %570 = vmatpush1.bf16.msra.mxu0 %v1243_v24 }
 0x3f3   :  { %571 = vmatprep.subr.bf16.mxu0 %v1247_v25 }
 0x3f6   :  { %572 = vmatpush1.bf16.msra.mxu0 %v1258_v28 }
 0x3f7   :  { %721 = vmatprep.subr.bf16.mxu0 %v1191_v5 }
 0x4a9   :  { %v435_v60 = vpop.f32.mrf.mxu0 }
 0x4aa   :  { %v442_v62 = vadd.f32 %v435_v60, %v162_v59 }
 0x4ab   :  { %v437_v63 = vpop.f32.mrf.mxu0 }
 0x4ac   :  { %v977_v2 = vmul.f32 -1.442695, %v442_v62  ;;  %v443_v3 = vadd.f32 %v437_v63, %v164_v61 }
 0x4ad   :  { %v439_v4 = vpop.f32.mrf.mxu0 }
 0x4ae   :  { %v978_v6 = vmul.f32 -1.442695, %v443_v3  ;;  %1055 = vpow2.f32 %v977_v2  ;;  %v174_v4 = vadd.f32 %v1349_v51, %v1282_v33 }
 0x4af   :  { %v440_v7 = vpop.f32.mrf.mxu0 }
 0x4b0   :  { %1057 = vpow2.f32 %v978_v6  ;;  %v176_v7 = vadd.f32 %v1351_v52, %v1285_v37 }
 0x4bb   :  { %v1056_v8 = vpop.eup %1055 }
 0x4bc   :  { %v450_v13 = vadd.f32 1.0, %v1056_v8 }
 0x4bd   :  { %v1058_v11 = vpop.eup %1057 }
 0x4be   :  { %v451_v12 = vadd.f32 1.0, %v1058_v11 }
 0x4c0   :  { %1059 = vrcp.f32 %v451_v12 }
 0x4c1   :  { %1061 = vrcp.f32 %v450_v13 }
 0x4cd   :  { %v1060_v14 = vpop.eup %1059 }
 0x4ce   :  { %v456_v16 = vmul.f32 2.0, %v1060_v14  ;;  %v1062_v18 = vpop.eup %1061 }
 0x4cf   :  { %v458_v21 = vmul.f32 %v1062_v18, %v386_v42 }
 0x4d0   :  { %v979_v17 = vadd.f32 -1.0, %v456_v16 }
 0x4d2   :  { %v459_v20 = vmul.f32 %v1062_v18, %v979_v17 }
 0x4d4   :  { %461 = vrot.lane.b32.xlu0 %v459_v20, %s1140_s3 }
 0x546   :  { %v462_v22 = vpop.permute.xlu0 %461 }
 0x547   :  { %v464_v23 = vadd.f32 %v462_v22, %v458_v21 }
 0x549   :  { %1063 = vtanh.f32 %v464_v23 }
 0x556   :  { %v1064_v26 = vpop.eup %1063 }
 0x557   :  { %v466_v27 = vmul.f32 %v1064_v26, %v1060_v14 }
 0x559   :  { %v472_v29 = vpack.c.bf16 %v466_v27, %v466_v27 }
 0x55b   :  { %474 = vrot.lane.b32.xlu1 %v472_v29, %s1140_s3 }
 0x5cd   :  { %v475_v30 = vpop.permute.xlu1 %474 }
 0x5ce   :  { %980 = vmatmul.mubr.msk.bf16.vlgmr.msra.gmra.mxu1 %vm241_vm1, %v475_v30 }
 0x5cf   :  { %644 = vmatpush1.bf16.msra.mxu1 %v1202_v9  ;;  %667 = vmatprep.mubr.bf16.mxu1 %v1139_v1 }
 0x5d0   :  { %645 = vmatprep.subr.bf16.mxu1 %v1204_v10 }
 0x5d3   :  { %646 = vmatpush1.bf16.msra.mxu1 %v1220_v15 }
 0x5d4   :  { %647 = vmatprep.subr.bf16.mxu1 %v1226_v19 }
 0x5d7   :  { %648 = vmatpush1.bf16.msra.mxu1 %v1243_v24 }
 0x5d8   :  { %649 = vmatprep.subr.bf16.mxu1 %v1247_v25 }
 0x5db   :  { %650 = vmatpush1.bf16.msra.mxu1 %v1258_v28 }
 0x5dc   :  { %799 = vmatprep.subr.bf16.mxu1 %v1191_v5 }
 0x68e   :  { %v513_v32 = vpop.f32.mrf.mxu1 }
 0x68f   :  { %v520_v35 = vadd.f32 %v513_v32, %v168_v31 }
 0x690   :  { %v515_v36 = vpop.f32.mrf.mxu1 }
 0x691   :  { %v981_v38 = vmul.f32 -1.442695, %v520_v35  ;;  %v521_v39 = vadd.f32 %v515_v36, %v170_v34 }
 0x692   :  { %v517_v40 = vpop.f32.mrf.mxu1 }
 0x693   :  { %v982_v41 = vmul.f32 -1.442695, %v521_v39  ;;  %1065 = vpow2.f32 %v981_v38  ;;  %v180_v38 = vadd.f32 %v1353_v53, %v1282_v33 }
 0x694   :  { %v518_v42 = vpop.f32.mrf.mxu1 }
 0x695   :  { %1067 = vpow2.f32 %v982_v41 }
 0x6a0   :  { %v1066_v43 = vpop.eup %1065 }
 0x6a1   :  { %v528_v46 = vadd.f32 1.0, %v1066_v43 }
 0x6a2   :  { %v1068_v44 = vpop.eup %1067 }
 0x6a3   :  { %v529_v45 = vadd.f32 1.0, %v1068_v44 }
 0x6a5   :  { %1069 = vrcp.f32 %v529_v45 }
 0x6a6   :  { %1071 = vrcp.f32 %v528_v46 }
 0x6b2   :  { %v1070_v5 = vpop.eup %1069 }
 0x6b3   :  { %v534_v47 = vmul.f32 2.0, %v1070_v5  ;;  %v1072_v49 = vpop.eup %1071 }
 0x6b4   :  { %v536_v59 = vmul.f32 %v1072_v49, %v464_v23 }
 0x6b5   :  { %v983_v48 = vadd.f32 -1.0, %v534_v47 }
 0x6b7   :  { %v537_v50 = vmul.f32 %v1072_v49, %v983_v48 }
 0x6b9   :  { %539 = vrot.lane.b32.xlu0 %v537_v50, %s1140_s3 }
 0x72b   :  { %v540_v60 = vpop.permute.xlu0 %539 }
 0x72c   :  { %v542_v61 = vadd.f32 %v540_v60, %v536_v59 }
 0x72e   :  { %1073 = vtanh.f32 %v542_v61 }
 0x73b   :  { %v1074_v62 = vpop.eup %1073 }
 0x73c   :  { %v544_v63 = vmul.f32 %v1074_v62, %v1070_v5 }
 0x73e   :  { %v550_v2 = vpack.c.bf16 %v544_v63, %v544_v63  ;;  %v188_v63 = vadd.f32 %v1359_v56, %v1285_v37 }
 0x740   :  { %552 = vrot.lane.b32.xlu1 %v550_v2, %s1140_s3 }
 0x7b2   :  { %v553_v3 = vpop.permute.xlu1 %552 }
 0x7b3   :  { %984 = vmatmul.mubr.msk.bf16.vlgmr.msra.gmra.mxu0 %vm241_vm1, %v553_v3 }
 0x7b4   :  { %722 = vmatpush1.bf16.msra.mxu0 %v1202_v9  ;;  %745 = vmatprep.mubr.bf16.mxu0 %v1139_v1 }
 0x7b5   :  { %723 = vmatprep.subr.bf16.mxu0 %v1204_v10 }
 0x7b8   :  { %724 = vmatpush1.bf16.msra.mxu0 %v1220_v15 }
 0x7b9   :  { %725 = vmatprep.subr.bf16.mxu0 %v1226_v19 }
 0x7bc   :  { %726 = vmatpush1.bf16.msra.mxu0 %v1243_v24 }
 0x7bd   :  { %727 = vmatprep.subr.bf16.mxu0 %v1247_v25 }
 0x7c0   :  { %728 = vmatpush1.bf16.msra.mxu0 %v1258_v28 }
 0x7c1   :  { %1011 = vmatprep.subr.mxu0 %v1138_v0 }
 0x873   :  { %v591_v6 = vpop.f32.mrf.mxu0 }
 0x874   :  { %v598_v8 = vadd.f32 %v591_v6, %v174_v4 }
 0x875   :  { %v593_v11 = vpop.f32.mrf.mxu0 }
 0x876   :  { %v985_v12 = vmul.f32 -1.442695, %v598_v8  ;;  %v599_v13 = vadd.f32 %v593_v11, %v176_v7 }
 0x877   :  { %v595_v14 = vpop.f32.mrf.mxu0 }
 0x878   :  { %v986_v16 = vmul.f32 -1.442695, %v599_v13  ;;  %1075 = vpow2.f32 %v985_v12 }
 0x879   :  { %v596_v17 = vpop.f32.mrf.mxu0 }
 0x87a   :  { %1077 = vpow2.f32 %v986_v16 }
 0x885   :  { %v1076_v18 = vpop.eup %1075 }
 0x886   :  { %v606_v22 = vadd.f32 1.0, %v1076_v18 }
 0x887   :  { %v1078_v20 = vpop.eup %1077 }
 0x888   :  { %v607_v21 = vadd.f32 1.0, %v1078_v20 }
 0x88a   :  { %1079 = vrcp.f32 %v607_v21 }
 0x88b   :  { %1081 = vrcp.f32 %v606_v22 }
 0x897   :  { %v1080_v51 = vpop.eup %1079 }
 0x898   :  { %v612_v23 = vmul.f32 2.0, %v1080_v51  ;;  %v1082_v27 = vpop.eup %1081 }
 0x899   :  { %v614_v29 = vmul.f32 %v1082_v27, %v542_v61  ;;  %v186_v61 = vadd.f32 %v1357_v55, %v1282_v33 }
 0x89a   :  { %v987_v26 = vadd.f32 -1.0, %v612_v23 }
 0x89c   :  { %v615_v52 = vmul.f32 %v1082_v27, %v987_v26 }
 0x89e   :  { %617 = vrot.lane.b32.xlu0 %v615_v52, %s1140_s3 }
 0x910   :  { %v618_v30 = vpop.permute.xlu0 %617 }
 0x911   :  { %v620_v31 = vadd.f32 %v618_v30, %v614_v29  ;;  %v192_v29 = vadd.f32 %v1361_v57, %v1282_v33 }
 0x913   :  { %1083 = vtanh.f32 %v620_v31 }
 0x920   :  { %v1084_v32 = vpop.eup %1083 }
 0x921   :  { %v622_v34 = vmul.f32 %v1084_v32, %v1080_v51 }
 0x923   :  { %v628_v35 = vpack.c.bf16 %v622_v34, %v622_v34 }
 0x925   :  { %630 = vrot.lane.b32.xlu1 %v628_v35, %s1140_s3 }
 0x997   :  { %v631_v36 = vpop.permute.xlu1 %630 }
 0x998   :  { %988 = vmatmul.mubr.msk.bf16.vlgmr.msra.gmra.mxu1 %vm241_vm1, %v631_v36 }
 0x999   :  { %800 = vmatpush1.bf16.msra.mxu1 %v1202_v9  ;;  %823 = vmatprep.mubr.bf16.mxu1 %v1139_v1  ;;  %v182_v9 = vadd.f32 %v1355_v54, %v1285_v37 }
 0x99a   :  { %801 = vmatprep.subr.bf16.mxu1 %v1204_v10 }
 0x99d   :  { %802 = vmatpush1.bf16.msra.mxu1 %v1220_v15 }
 0x99e   :  { %803 = vmatprep.subr.bf16.mxu1 %v1226_v19 }
 0x9a1   :  { %804 = vmatpush1.bf16.msra.mxu1 %v1243_v24 }
 0x9a2   :  { %805 = vmatprep.subr.bf16.mxu1 %v1247_v25 }
 0x9a5   :  { %806 = vmatpush1.bf16.msra.mxu1 %v1258_v28 }
 0xa58   :  { %v669_v39 = vpop.f32.mrf.mxu1 }
 0xa59   :  { %v676_v1 = vadd.f32 %v669_v39, %v180_v38 }
 0xa5a   :  { %v671_v40 = vpop.f32.mrf.mxu1 }
 0xa5b   :  { %v989_v10 = vmul.f32 -1.442695, %v676_v1  ;;  %v677_v41 = vadd.f32 %v671_v40, %v182_v9 }
 0xa5c   :  { %v673_v15 = vpop.f32.mrf.mxu1 }
 0xa5d   :  { %v990_v42 = vmul.f32 -1.442695, %v677_v41  ;;  %1085 = vpow2.f32 %v989_v10 }
 0xa5e   :  { %v674_v19 = vpop.f32.mrf.mxu1 }
 0xa5f   :  { %1087 = vpow2.f32 %v990_v42  ;;  %v863_v19 = vld [vmem:[%s1471_s4 + $0x30] sm:$0xff] }
 0xa6a   :  { %v1086_v24 = vpop.eup %1085 }
 0xa6b   :  { %v684_v28 = vadd.f32 1.0, %v1086_v24  ;;  %v862_v24 = vld [vmem:[%s1471_s4 + $0x28] sm:$0xff] }
 0xa6c   :  { %v1088_v25 = vpop.eup %1087 }
 0xa6d   :  { %v685_v43 = vadd.f32 1.0, %v1088_v25  ;;  %v861_v25 = vld [vmem:[%s1471_s4 + $0x20] sm:$0xff] }
 0xa6f   :  { %1089 = vrcp.f32 %v685_v43  ;;  %v860_v43 = vld [vmem:[%s1471_s4 + $0x18] sm:$0xff] }
 0xa70   :  { %1091 = vrcp.f32 %v684_v28  ;;  %v859_v28 = vld [vmem:[%s1471_s4 + $0x10] sm:$0xff] }
 0xa7c   :  { %v1090_v53 = vpop.eup %1089 }
 0xa7d   :  { %v690_v44 = vmul.f32 2.0, %v1090_v53  ;;  %v1092_v46 = vpop.eup %1091 }
 0xa7e   :  { %v692_v5 = vmul.f32 %v1092_v46, %v620_v31  ;;  %v194_v31 = vadd.f32 %v1363_v58, %v1285_v37  ;;  %v864_v58 = vld [vmem:[%s1471_s4 + $0x38] sm:$0xff] }
 0xa7f   :  { %v991_v45 = vadd.f32 -1.0, %v690_v44  ;;  %v857_v44 = vld [vmem:[%s1471_s4] sm:$0xff] }
 0xa81   :  { %v693_v54 = vmul.f32 %v1092_v46, %v991_v45 }
 0xa83   :  { %695 = vrot.lane.b32.xlu0 %v693_v54, %s1140_s3 }
 0xaf5   :  { %v696_v47 = vpop.permute.xlu0 %695 }
 0xaf6   :  { %v698_v48 = vadd.f32 %v696_v47, %v692_v5 }
 0xaf8   :  { %1093 = vtanh.f32 %v698_v48 }
 0xb05   :  { %v1094_v49 = vpop.eup %1093 }
 0xb06   :  { %v700_v50 = vmul.f32 %v1094_v49, %v1090_v53  ;;  %v858_v53 = vld [vmem:[%s1471_s4 + $0x8] sm:$0xff]  ;;  %v1000_v49 = vld [vmem:[%s1472_s5] ss:$0 sm:$0xff] }
 0xb08   :  { %v706_v59 = vpack.c.bf16 %v700_v50, %v700_v50 }
 0xb0a   :  { %708 = vrot.lane.b32.xlu1 %v706_v59, %s1140_s3 }
 0xb7c   :  { %v709_v60 = vpop.permute.xlu1 %708 }
 0xb7d   :  { %992 = vmatmul.mubr.msk.bf16.vlgmr.msra.gmra.mxu0 %vm241_vm1, %v709_v60 }
 0xb7e   :  { %1012 = vmatpush3.msra.mxu0 %v864_v58  ;;  %1027 = vmatprep.mubr.msk.f32.mxu0 %vm1141_vm2, %v1138_v0 }
 0xb7f   :  { %1013 = vmatprep.subr.mxu0 %v1138_v0 }
 0xb80   :  { %1014 = vmatpush3.msra.mxu0 %v863_v19 }
 0xb81   :  { %1015 = vmatprep.subr.mxu0 %v1138_v0 }
 0xb82   :  { %1016 = vmatpush3.msra.mxu0 %v862_v24 }
 0xb83   :  { %1017 = vmatprep.subr.mxu0 %v1138_v0 }
 0xb84   :  { %1018 = vmatpush3.msra.mxu0 %v861_v25 }
 0xb85   :  { %1019 = vmatprep.subr.mxu0 %v1138_v0 }
 0xb86   :  { %1020 = vmatpush3.msra.mxu0 %v860_v43 }
 0xb87   :  { %1021 = vmatprep.subr.mxu0 %v1138_v0 }
 0xb88   :  { %1022 = vmatpush3.msra.mxu0 %v859_v28 }
 0xb89   :  { %1023 = vmatprep.subr.mxu0 %v1138_v0 }
 0xb8a   :  { %1024 = vmatpush3.msra.mxu0 %v858_v53 }
 0xb8b   :  { %1025 = vmatprep.subr.mxu0 %v1138_v0 }
 0xb8c   :  { %1026 = vmatpush3.msra.mxu0 %v857_v44 }
 0xc3d   :  { %v747_v62 = vpop.f32.mrf.mxu0 }
 0xc3e   :  { %v754_v2 = vadd.f32 %v747_v62, %v186_v61 }
 0xc3f   :  { %v749_v3 = vpop.f32.mrf.mxu0 }
 0xc40   :  { %v993_v4 = vmul.f32 -1.442695, %v754_v2  ;;  %v755_v6 = vadd.f32 %v749_v3, %v188_v63 }
 0xc41   :  { %v751_v7 = vpop.f32.mrf.mxu0 }
 0xc42   :  { %v994_v8 = vmul.f32 -1.442695, %v755_v6  ;;  %1095 = vpow2.f32 %v993_v4 }
 0xc43   :  { %v752_v11 = vpop.f32.mrf.mxu0 }
 0xc44   :  { %1097 = vpow2.f32 %v994_v8 }
 0xc4f   :  { %v1096_v12 = vpop.eup %1095 }
 0xc50   :  { %v762_v16 = vadd.f32 1.0, %v1096_v12 }
 0xc51   :  { %v1098_v13 = vpop.eup %1097 }
 0xc52   :  { %v763_v14 = vadd.f32 1.0, %v1098_v13 }
 0xc54   :  { %1099 = vrcp.f32 %v763_v14 }
 0xc55   :  { %1101 = vrcp.f32 %v762_v16 }
 0xc61   :  { %v1100_v55 = vpop.eup %1099 }
 0xc62   :  { %v768_v17 = vmul.f32 2.0, %v1100_v55  ;;  %v1102_v20 = vpop.eup %1101 }
 0xc63   :  { %v770_v21 = vmul.f32 %v1102_v20, %v698_v48 }
 0xc64   :  { %v995_v18 = vadd.f32 -1.0, %v768_v17 }
 0xc66   :  { %v771_v56 = vmul.f32 %v1102_v20, %v995_v18 }
 0xc68   :  { %773 = vrot.lane.b32.xlu0 %v771_v56, %s1140_s3 }
 0xcda   :  { %v774_v22 = vpop.permute.xlu0 %773 }
 0xcdb   :  { %v776_v51 = vadd.f32 %v774_v22, %v770_v21 }
 0xcdd   :  { %1103 = vtanh.f32 %v776_v51 }
 0xcea   :  { %v1104_v23 = vpop.eup %1103 }
 0xceb   :  { %v778_v26 = vmul.f32 %v1104_v23, %v1100_v55 }
 0xced   :  { %v784_v27 = vpack.c.bf16 %v778_v26, %v778_v26 }
 0xcef   :  { %786 = vrot.lane.b32.xlu1 %v784_v27, %s1140_s3 }
 0xd61   :  { %v787_v52 = vpop.permute.xlu1 %786 }
 0xd62   :  { %996 = vmatmul.mubr.msk.bf16.vlgmr.msra.gmra.mxu1 %vm241_vm1, %v787_v52 }
 0xe22   :  { %v825_v30 = vpop.f32.mrf.mxu1 }
 0xe23   :  { %v832_v32 = vadd.f32 %v825_v30, %v192_v29 }
 0xe24   :  { %v827_v34 = vpop.f32.mrf.mxu1 }
 0xe25   :  { %v997_v35 = vmul.f32 -1.442695, %v832_v32  ;;  %v833_v36 = vadd.f32 %v827_v34, %v194_v31 }
 0xe26   :  { %v829_v38 = vpop.f32.mrf.mxu1 }
 0xe27   :  { %v998_v39 = vmul.f32 -1.442695, %v833_v36  ;;  %1105 = vpow2.f32 %v997_v35 }
 0xe28   :  { %v830_v9 = vpop.f32.mrf.mxu1 }
 0xe29   :  { %1107 = vpow2.f32 %v998_v39 }
 0xe34   :  { %v1106_v1 = vpop.eup %1105 }
 0xe35   :  { %v840_v41 = vadd.f32 1.0, %v1106_v1 }
 0xe36   :  { %v1108_v40 = vpop.eup %1107 }
 0xe37   :  { %v841_v10 = vadd.f32 1.0, %v1108_v40 }
 0xe39   :  { %1109 = vrcp.f32 %v841_v10 }
 0xe3a   :  { %1111 = vrcp.f32 %v840_v41 }
 0xe46   :  { %v1110_v33 = vpop.eup %1109 }
 0xe47   :  { %v846_v57 = vmul.f32 2.0, %v1110_v33  ;;  %v1112_v42 = vpop.eup %1111 }
 0xe48   :  { %v848_v45 = vmul.f32 %v1112_v42, %v776_v51 }
 0xe49   :  { %v999_v15 = vadd.f32 -1.0, %v846_v57 }
 0xe4b   :  { %v849_v37 = vmul.f32 %v1112_v42, %v999_v15 }
 0xe4d   :  { %851 = vrot.lane.b32.xlu0 %v849_v37, %s1140_s3 }
 0xebf   :  { %v852_v46 = vpop.permute.xlu0 %851 }
 0xec0   :  { %v854_v54 = vadd.f32 %v852_v46, %v848_v45 }
 0xec2   :  { %1113 = vtanh.f32 %v854_v54 }
 0xecf   :  { %v1114_v5 = vpop.eup %1113 }
 0xed0   :  { %v856_v47 = vmul.f32 %v1114_v5, %v1110_v33 }
 0xed2   :  { %873 = vrot.lane.b32.xlu1 %v856_v47, %s1140_s3 }
 0xf44   :  { %v874_v48 = vpop.permute.xlu1 %873 }
 0xf45   :  { %1028 = vmatmul.mubr.msk.f32.vlgmr.msra.gmra.mxu0 %vm241_vm1, %v874_v48 }
0x1005   :  { %v943_v50 = vpop.f32.mrf.mxu0 }
0x1006   :  { %v944_v59 = vadd.f32 %v1000_v49, %v943_v50 }
0x1007   :  { %v1029_v0 = vpop.f32.mrf.mxu0 }
0x1008   :  { %948 = vst.msk [vmem:[%s1473_s6] sm:$0xff] %vm947_vm3, %v944_v59 }
0x1009   :  { %953 = vsyncpa [#allocation4], 1 }

</bundles_post_ra>
